<compile_context>
chip_gen: v7x
topology: tpu7x:2x2x1
jax: 0.10.0
libtpu: 0.0.40
codegen_flags: <defaults>
</compile_context>

<pallas_src>
import functools
import math

import jax
import jax.numpy as jnp
from jax.experimental import pallas as pl
from jax.experimental.pallas import tpu as pltpu


_LANES = 512          # lane-dense last dim (multiple of 128)
_MAX_TILE_ROWS = 256  # 256 x 512 f32 tile = 512 KiB per buffer


def _mix_u32(idx_u32, seed_u32):
    """murmur3-style 32-bit finalizer: (global index, seed) -> uniform uint32."""
    x = idx_u32 ^ seed_u32
    x = x * jnp.uint32(0x9E3779B9)
    x = x ^ (x >> 16)
    x = x * jnp.uint32(0x85EBCA6B)
    x = x ^ (x >> 13)
    x = x * jnp.uint32(0xC2B2AE35)
    x = x ^ (x >> 16)
    return x


def _global_indices(shape, tile_elems):
    """uint32 global linear index of every element in the current tile."""
    rows, cols = shape
    base = pl.program_id(0).astype(jnp.uint32) * jnp.uint32(tile_elems)
    r = jax.lax.broadcasted_iota(jnp.int32, shape, 0)
    c = jax.lax.broadcasted_iota(jnp.int32, shape, 1)
    local = r * cols + c                       # < tile_elems, fits int32
    return base + local.astype(jnp.uint32)


def _mask_kernel_train(seed_ref, x_ref, o_ref, *, threshold, tile_elems):
    seed = seed_ref[0].astype(jnp.uint32)
    idx = _global_indices(x_ref.shape, tile_elems)
    bits = _mix_u32(idx, seed)
    keep = bits >= jnp.uint32(threshold)       # P(keep) = 1 - mask_ratio
    x = x_ref[...]
    o_ref[...] = jnp.where(keep, x, jnp.zeros_like(x))


def _mask_kernel_eval(seed_ref, x_ref, o_ref, *, threshold, tile_elems,
                      n_samples=5):
    seed = seed_ref[0].astype(jnp.uint32)
    idx = _global_indices(x_ref.shape, tile_elems)
    thr = jnp.uint32(threshold)
    count = jnp.zeros(x_ref.shape, jnp.float32)
    for s in range(n_samples):                 # static 5-way unroll
        salt = seed + jnp.uint32(((s + 1) * 0x7F4A7C15) & 0xFFFFFFFF)
        bits = _mix_u32(idx, salt)
        count = count + (bits >= thr).astype(jnp.float32)
    x = x_ref[...].astype(jnp.float32)
    o_ref[...] = (x * (count * (1.0 / n_samples))).astype(o_ref.dtype)


def stochastic_feature_mask(x, seed, *, mask_ratio=0.2, training=True):
    """x: (B, C, H, W) float array. seed: python int. Returns same shape/dtype."""
    orig_shape = x.shape
    total = math.prod(orig_shape)

    # Lane-dense layout: flatten to (rows, 512), pad the tail.
    rows_raw = -(-total // _LANES)
    if rows_raw >= _MAX_TILE_ROWS:
        tile_rows = _MAX_TILE_ROWS
    else:
        tile_rows = max(8, ((rows_raw + 7) // 8) * 8)
    rows = -(-rows_raw // tile_rows) * tile_rows
    padded = rows * _LANES

    x_flat = x.reshape(-1)
    if padded > total:
        x_flat = jnp.pad(x_flat, (0, padded - total))
    x2d = x_flat.reshape(rows, _LANES)

    threshold = min(int(round(mask_ratio * (2.0 ** 32))), 2 ** 32 - 1)
    tile_elems = tile_rows * _LANES
    seed_arr = jnp.array([seed], dtype=jnp.int32)

    kernel = functools.partial(
        _mask_kernel_train if training else _mask_kernel_eval,
        threshold=threshold, tile_elems=tile_elems)

    out2d = pl.pallas_call(
        kernel,
        out_shape=jax.ShapeDtypeStruct((rows, _LANES), x.dtype),
        grid_spec=pltpu.PrefetchScalarGridSpec(
            num_scalar_prefetch=1,                 # seed lives in SMEM
            grid=(rows // tile_rows,),
            in_specs=[pl.BlockSpec((tile_rows, _LANES), lambda i, _: (i, 0))],
            out_specs=pl.BlockSpec((tile_rows, _LANES), lambda i, _: (i, 0)),
        ),
        compiler_params=pltpu.CompilerParams(
            dimension_semantics=("parallel",)),    # shard tiles across TCs (v7x)
    )(seed_arr, x2d)

    return out2d.reshape(-1)[:total].reshape(orig_shape)


if __name__ == "__main__":
    key = jax.random.PRNGKey(0)
    B, C, H, W = 2, 4, 16, 16          # feature_dim = C = 4 (unused in forward)
    x = jax.random.normal(key, (B, C, H, W), dtype=jnp.float32)

    y_train = jax.block_until_ready(
        stochastic_feature_mask(x, seed=123, mask_ratio=0.2, training=True))
    y_eval = jax.block_until_ready(
        stochastic_feature_mask(x, seed=456, mask_ratio=0.2, training=False))

    assert y_train.shape == x.shape and y_eval.shape == x.shape
    assert y_train.dtype == x.dtype and y_eval.dtype == x.dtype

    # training: every element is either x or exactly 0
    ok_train = bool(jnp.all((y_train == 0.0) | (y_train == x)))
    # keep fraction should be roughly 1 - mask_ratio = 0.8
    keep_frac = float(jnp.mean((y_train != 0.0).astype(jnp.float32)))
    ok_frac = 0.6 < keep_frac < 0.95

    # eval: each element equals x * k/5 for some integer k in [0, 5]
    safe_x = jnp.where(x != 0, x, 1.0)
    ratio = jnp.where(x != 0, y_eval / safe_x, 0.0) * 5.0
    ok_eval = bool(jnp.all(jnp.abs(ratio - jnp.round(ratio)) < 1e-3)) and bool(
        jnp.all((ratio > -1e-3) & (ratio < 5.0 + 1e-3)))

    assert ok_train and ok_frac and ok_eval
    print("KERNEL_OK")
</pallas_src>

<mosaic_0001>
module attributes {stable_mosaic.version = 11 : i64} {
  func.func @_mask_kernel_train(%arg0: i32, %arg1: memref<1xi32, #tpu.memory_space<smem>>, %arg2: memref<8x512xf32, #tpu.memory_space<vmem>>, %arg3: memref<8x512xf32, #tpu.memory_space<vmem>>) attributes {dimension_semantics = [#tpu.dimension_semantics<parallel>], iteration_bounds = array<i64: 1>, scalar_prefetch = 1 : i64, scratch_operands = 0 : i64, tpu.core_type = #tpu.core_type<tc>, window_params = [{transform_indices = @transform_0, window_bounds = array<i64: 8, 512>}, {transform_indices = @transform_1, window_bounds = array<i64: 8, 512>}]} {
    %c0 = arith.constant 0 : index
    %0 = memref.load %arg1[%c0] : memref<1xi32, #tpu.memory_space<smem>>
    %c4096_i32 = arith.constant 4096 : i32
    %1 = arith.muli %arg0, %c4096_i32 : i32
    %2 = tpu.iota {dimensions = array<i32: 0>} : vector<8x512xi32>
    %3 = tpu.iota {dimensions = array<i32: 1>} : vector<8x512xi32>
    %c512_i32 = arith.constant 512 : i32
    %4 = vector.broadcast %c512_i32 : i32 to vector<8x512xi32>
    %5 = arith.muli %2, %4 : vector<8x512xi32>
    %6 = arith.addi %5, %3 : vector<8x512xi32>
    %7 = vector.broadcast %1 : i32 to vector<8x512xi32>
    %8 = arith.addi %7, %6 : vector<8x512xi32>
    %9 = vector.broadcast %0 : i32 to vector<8x512xi32>
    %10 = arith.xori %8, %9 : vector<8x512xi32>
    %c-1640531527_i32 = arith.constant -1640531527 : i32
    %11 = vector.broadcast %c-1640531527_i32 : i32 to vector<8x512xi32>
    %12 = arith.muli %10, %11 : vector<8x512xi32>
    %c16_i32 = arith.constant 16 : i32
    %13 = vector.broadcast %c16_i32 : i32 to vector<8x512xi32>
    %14 = arith.shrui %12, %13 : vector<8x512xi32>
    %15 = arith.xori %12, %14 : vector<8x512xi32>
    %c-2048144789_i32 = arith.constant -2048144789 : i32
    %16 = vector.broadcast %c-2048144789_i32 : i32 to vector<8x512xi32>
    %17 = arith.muli %15, %16 : vector<8x512xi32>
    %c13_i32 = arith.constant 13 : i32
    %18 = vector.broadcast %c13_i32 : i32 to vector<8x512xi32>
    %19 = arith.shrui %17, %18 : vector<8x512xi32>
    %20 = arith.xori %17, %19 : vector<8x512xi32>
    %c-1028477387_i32 = arith.constant -1028477387 : i32
    %21 = vector.broadcast %c-1028477387_i32 : i32 to vector<8x512xi32>
    %22 = arith.muli %20, %21 : vector<8x512xi32>
    %c16_i32_0 = arith.constant 16 : i32
    %23 = vector.broadcast %c16_i32_0 : i32 to vector<8x512xi32>
    %24 = arith.shrui %22, %23 : vector<8x512xi32>
    %25 = arith.xori %22, %24 : vector<8x512xi32>
    %c858993459_i32 = arith.constant 858993459 : i32
    %26 = vector.broadcast %c858993459_i32 : i32 to vector<8x512xi32>
    %27 = arith.cmpi uge, %25, %26 : vector<8x512xi32>
    %c0_1 = arith.constant 0 : index
    %c0_2 = arith.constant 0 : index
    %28 = vector.load %arg2[%c0_1, %c0_2] : memref<8x512xf32, #tpu.memory_space<vmem>>, vector<8x512xf32>
    %cst = arith.constant 0.000000e+00 : f32
    %29 = vector.broadcast %cst : f32 to vector<8x512xf32>
    %30 = arith.select %27, %28, %29 : vector<8x512xi1>, vector<8x512xf32>
    %c0_3 = arith.constant 0 : index
    %c0_4 = arith.constant 0 : index
    %31 = vector.load %arg3[%c0_3, %c0_4] : memref<8x512xf32, #tpu.memory_space<vmem>>, vector<8x512xf32>
    tpu.vector_store %arg3[%c0_3, %c0_4], %30 {strides = array<i32>} : memref<8x512xf32, #tpu.memory_space<vmem>>, vector<8x512xf32>,
    return
  }
  func.func @transform_0(%arg0: i32, %arg1: memref<1xi32, #tpu.memory_space<smem>>) -> (i32, i32) {
    %c0_i32 = arith.constant 0 : i32
    %c0_i32_0 = arith.constant 0 : i32
    return %arg0, %c0_i32 : i32, i32
  }
  func.func @transform_1(%arg0: i32, %arg1: memref<1xi32, #tpu.memory_space<smem>>) -> (i32, i32) {
    %c0_i32 = arith.constant 0 : i32
    %c0_i32_0 = arith.constant 0 : i32
    return %arg0, %c0_i32 : i32, i32
  }
}

</mosaic_0001>

<bundles_post_ra>
// kernel: tpu_custom_call.1
= control target key start
LH: loop header
LB: loop body
LE: loop exit
PB: predicated region body
PF: predicated region fallthrough
CT: control target
= control target key end

     0   :  { %8 = vsyncpa [#allocation5], 0  ;;  %s208_s0 = inlined_call_operand.<no memory space> [shape: s32[1], index: 0, kind: input, shape index: {}]   ;;  %s209_s1 = inlined_call_operand.hbm [shape: f32[8,512], index: 1, kind: input, shape index: {}]   ;;  %s210_s2 = inlined_call_operand.hbm [shape: f32[8,512], index: 2, kind: output, shape index: {}]  }
   0x1   :  { %9 = vsyncpa [#allocation6], 0  ;;  %s164_s9 = smov [#allocation4]   ;;  %s116_s13 = scalar_lea.hbm %s209_s1, 512 }
   0x2   :  { %s16_s10 = sshll.u32 %s164_s9, 4  ;;  %p117_p0 = scmp.ne.s32.totalorder %s209_s1, %s116_s13  ;;  %s17_s10 = int_to_ptr.vmem [resolvable:$true] %s16_s10 }
   0x3   :  { %p120_p1 = scmp.lt.u32.totalorder %s116_s13, %s209_s1 }
   0x5   :  { %p122_p2 = pnand %p120_p1, %p117_p0 }
   0x7   :  { %125 = shalt.err (!%p122_p2)
}
   0x8   :  { %s126_s18 = scalar_lea.vmem %s17_s10, 512  ;;  %p131_p4 = scmp.lt.s32.totalorder %s17_s10, %s17_s10 }
   0x9   :  { %p127_p3 = scmp.ne.s32.totalorder %s17_s10, %s126_s18  ;;  %p132_p5 = scmp.lt.s32.totalorder %s126_s18, %s126_s18 }
   0xb   :  { %p133_p6 = por %p132_p5, %p131_p4 }
   0xd   :  { %p134_p7 = pnand %p133_p6, %p127_p3 }
   0xf   :  { %137 = shalt.err (!%p134_p7)
}
  0x10   :  { %19 = dma.hbm_to_vmem [thread:$0]  %s209_s1, 512, %s17_s10, [#allocation5]  }
  0x11   :  { %160 = dma.done.wait [#allocation5], 512  }
  0x12   :  { %161 = vsyncadd [#allocation5], 4294966784  ;;  %v25_v0 = vlaneseq  ;;  %v42_v7 = vstv %s208_s0  ;;  %v87_v49 = vld [vmem:[#allocation4] sm:$0xff]  ;;  %v88_v51 = vld [vmem:[#allocation4 + $0x8] sm:$0xff]  ;;  %s165_s0 = smov [#allocation7]  }
  0x13   :  { %s105_s1 = sshll.u32 %s165_s0, 4  ;;  %v89_v53 = vld [vmem:[#allocation4 + $0x10] sm:$0xff]  ;;  %v90_v55 = vld [vmem:[#allocation4 + $0x18] sm:$0xff]  ;;  %s106_s1 = int_to_ptr.vmem [resolvable:$true] %s105_s1 }
  0x14   :  { %v26_v1 = vshrl.u32 %v25_v0, 7  ;;  %v28_v2 = vand.u32 127, %v25_v0  ;;  %s138_s23 = scalar_lea.vmem %s106_s1, 512  ;;  %p143_p9 = scmp.lt.s32.totalorder %s106_s1, %s106_s1 }
  0x15   :  { %p139_p8 = scmp.ne.s32.totalorder %s106_s1, %s138_s23  ;;  %p144_p10 = scmp.lt.s32.totalorder %s138_s23, %s138_s23 }
  0x16   :  { %v32_v3 = vmul.u32 512, %v26_v1  ;;  %v29_v4 = vadd.s32 128, %v28_v2  ;;  %v30_v5 = vadd.s32 256, %v28_v2  ;;  %v31_v6 = vadd.s32 384, %v28_v2 }
  0x17   :  { %p145_p11 = por %p144_p10, %p143_p9 }
  0x18   :  { %v33_v8 = vadd.s32 %v32_v3, %v28_v2  ;;  %v34_v9 = vadd.s32 %v32_v3, %v29_v4  ;;  %v35_v10 = vadd.s32 %v32_v3, %v30_v5  ;;  %v36_v11 = vadd.s32 %v32_v3, %v31_v6 }
  0x19   :  { %p146_p12 = pnand %p145_p11, %p139_p8 }
  0x1a   :  { %v43_v12 = vxor.u32 %v42_v7, %v33_v8  ;;  %v44_v13 = vxor.u32 %v42_v7, %v34_v9  ;;  %v45_v14 = vxor.u32 %v42_v7, %v35_v10  ;;  %v46_v15 = vxor.u32 %v42_v7, %v36_v11 }
  0x1c   :  { %v47_v16 = vmul.u32 2654435769, %v43_v12  ;;  %v48_v17 = vmul.u32 2654435769, %v44_v13 }
  0x1d   :  { %v49_v18 = vmul.u32 2654435769, %v45_v14  ;;  %v50_v19 = vmul.u32 2654435769, %v46_v15 }
  0x1e   :  { %v51_v20 = vshrl.u32 %v47_v16, 16  ;;  %v52_v21 = vshrl.u32 %v48_v17, 16 }
  0x1f   :  { %v53_v22 = vshrl.u32 %v49_v18, 16  ;;  %v54_v23 = vshrl.u32 %v50_v19, 16 }
  0x20   :  { %v55_v24 = vxor.u32 %v51_v20, %v47_v16  ;;  %v56_v25 = vxor.u32 %v52_v21, %v48_v17 }
  0x21   :  { %v57_v26 = vxor.u32 %v53_v22, %v49_v18  ;;  %v58_v27 = vxor.u32 %v54_v23, %v50_v19 }
  0x22   :  { %v59_v28 = vmul.u32 2246822507, %v55_v24  ;;  %v60_v29 = vmul.u32 2246822507, %v56_v25 }
  0x23   :  { %v61_v30 = vmul.u32 2246822507, %v57_v26  ;;  %v62_v31 = vmul.u32 2246822507, %v58_v27 }
  0x24   :  { %v63_v32 = vshrl.u32 %v59_v28, 13  ;;  %v64_v33 = vshrl.u32 %v60_v29, 13 }
  0x25   :  { %v65_v34 = vshrl.u32 %v61_v30, 13  ;;  %v66_v35 = vshrl.u32 %v62_v31, 13 }
  0x26   :  { %v67_v36 = vxor.u32 %v63_v32, %v59_v28  ;;  %v68_v37 = vxor.u32 %v64_v33, %v60_v29 }
  0x27   :  { %v69_v38 = vxor.u32 %v65_v34, %v61_v30  ;;  %v70_v39 = vxor.u32 %v66_v35, %v62_v31 }
  0x28   :  { %v71_v40 = vmul.u32 3266489909, %v67_v36  ;;  %v72_v41 = vmul.u32 3266489909, %v68_v37 }
  0x29   :  { %v73_v42 = vmul.u32 3266489909, %v69_v38  ;;  %v74_v43 = vmul.u32 3266489909, %v70_v39 }
  0x2a   :  { %v75_v44 = vshrl.u32 %v71_v40, 16  ;;  %v76_v45 = vshrl.u32 %v72_v41, 16 }
  0x2b   :  { %v77_v46 = vshrl.u32 %v73_v42, 16  ;;  %v78_v47 = vshrl.u32 %v74_v43, 16 }
  0x2c   :  { %v79_v48 = vxor.u32 %v75_v44, %v71_v40  ;;  %v80_v50 = vxor.u32 %v76_v45, %v72_v41 }
  0x2d   :  { %v81_v52 = vxor.u32 %v77_v46, %v73_v42  ;;  %v82_v54 = vxor.u32 %v78_v47, %v74_v43 }
  0x2e   :  { %vm83_vm0 = vcmp.ge.u32.totalorder %v79_v48, 858993459  ;;  %vm84_vm1 = vcmp.ge.u32.totalorder %v80_v50, 858993459 }
  0x2f   :  { %v91_v56 = vsel %vm83_vm0, %v87_v49, 0.0  ;;  %v92_v57 = vsel %vm84_vm1, %v88_v51, 0.0  ;;  %vm85_vm2 = vcmp.ge.u32.totalorder %v81_v52, 858993459  ;;  %vm86_vm3 = vcmp.ge.u32.totalorder %v82_v54, 858993459 }
  0x30   :  { %95 = vst [vmem:[#allocation7] sm:$0xff] %v91_v56  ;;  %96 = vst [vmem:[#allocation7 + $0x8] sm:$0xff] %v92_v57  ;;  %v93_v58 = vsel %vm85_vm2, %v89_v53, 0.0  ;;  %v94_v59 = vsel %vm86_vm3, %v90_v55, 0.0 }
  0x31   :  { %97 = vst [vmem:[#allocation7 + $0x10] sm:$0xff] %v93_v58  ;;  %98 = vst [vmem:[#allocation7 + $0x18] sm:$0xff] %v94_v59 }
  0x32   :  { %149 = shalt.err (!%p146_p12)
}
  0x33   :  { %s150_s26 = scalar_lea.hbm %s210_s2, 512 }
  0x34   :  { %p151_p13 = scmp.ne.s32.totalorder %s210_s2, %s150_s26  ;;  %p154_p0 = scmp.lt.u32.totalorder %s150_s26, %s210_s2 }
  0x36   :  { %p156_p1 = pnand %p154_p0, %p151_p13 }
  0x38   :  { %159 = shalt.err (!%p156_p1)
}
  0x39   :  { %108 = dma.vmem_to_hbm [thread:$0]  %s106_s1, 512, %s210_s2, [#allocation6]  }
  0x3a   :  { %162 = dma.done.wait [#allocation6], 512  }
  0x3b   :  { %163 = vsyncadd [#allocation6], 4294966784 }
  0x3c   :  { %112 = vsyncpa [#allocation5], 1 }
  0x3d   :  { %113 = vsyncpa [#allocation6], 1 }

</bundles_post_ra>
